<compile_context>
chip_gen: v7x
topology: tpu7x:2x2x1
jax: 0.10.0
libtpu: 0.0.40
codegen_flags: <defaults>
</compile_context>

<pallas_src>
import math

import jax
import jax.numpy as jnp
from jax.experimental import pallas as pl
from jax.experimental.pallas import tpu as pltpu

_SQRT_2_OVER_PI = math.sqrt(2.0 / math.pi)
_C1 = _SQRT_2_OVER_PI * 0.044715  # folded: sqrt(2/pi) * 0.044715


def _gelu_kernel(x_ref, o_ref):
    x = x_ref[...]
    # Keep the cheap VALU chain in the native dtype for f32/bf16 (bf16 VALU is
    # native on v6e/v7x; Mosaic handles v5e); promote anything else to f32.
    cdt = x.dtype if x.dtype in (jnp.float32, jnp.bfloat16) else jnp.float32
    xc = x.astype(cdt)
    c0 = jnp.asarray(_SQRT_2_OVER_PI, cdt)
    c1 = jnp.asarray(_C1, cdt)
    half = jnp.asarray(0.5, cdt)
    # inner == sqrt(2/pi) * (x + 0.044715 * x^3), with constants folded.
    inner = xc * (c0 + c1 * xc * xc)
    hx = half * xc
    y = hx + hx * jnp.tanh(inner)  # tanh goes to the EUP slot
    o_ref[...] = y.astype(o_ref.dtype)


def gelu(x: jax.Array, *, target_block_bytes: int = 2 * 1024 * 1024) -> jax.Array:
    """Tanh-approximation GELU, matching the PyTorch module exactly."""
    orig_shape = x.shape
    total = x.size
    itemsize = jnp.dtype(x.dtype).itemsize

    # Lane-dense flattening: pick L as a large multiple of 128 dividing the
    # total element count so output stores are unmasked full-lane vst.
    L = None
    for cand in (4096, 2048, 1024, 512, 256, 128):
        if total % cand == 0:
            L = cand
            break
    if L is None:
        # Fallback: natural (rows, hidden) layout. A full-extent last dim is
        # always a legal block shape even if not a multiple of 128.
        L = orig_shape[-1]
    rows = total // L
    x2 = x.reshape(rows, L)

    # Row tile from a byte budget (~2 MiB input block), multiple of 8 rows.
    budget_rows = max(8, (target_block_bytes // (L * itemsize)) // 8 * 8)
    tile_rows = rows if rows <= budget_rows else budget_rows
    grid = (pl.cdiv(rows, tile_rows),)

    # Double-buffered input + output blocks, plus headroom. Stays well under
    # the default scoped-VMEM limit on v5e/v6e/v7x for 2 MiB blocks.
    block_bytes = tile_rows * L * itemsize
    vmem_limit = int(max(4 * block_bytes + (4 << 20), 8 << 20))

    out = pl.pallas_call(
        _gelu_kernel,
        out_shape=jax.ShapeDtypeStruct((rows, L), x.dtype),
        grid_spec=pltpu.PrefetchScalarGridSpec(
            num_scalar_prefetch=0,
            grid=grid,
            in_specs=[pl.BlockSpec((tile_rows, L), lambda i: (i, 0))],
            out_specs=pl.BlockSpec((tile_rows, L), lambda i: (i, 0)),
        ),
        compiler_params=pltpu.CompilerParams(
            dimension_semantics=("parallel",),
            vmem_limit_bytes=vmem_limit,
        ),
    )(x2)

    return out.reshape(orig_shape)


def _gelu_ref(x):
    # Pure-JAX reference mirroring the PyTorch forward (f32 math).
    xf = x.astype(jnp.float32)
    c = jnp.float32(_SQRT_2_OVER_PI)
    y = 0.5 * xf * (1.0 + jnp.tanh(c * (xf + 0.044715 * jnp.power(xf, 3))))
    return y.astype(x.dtype)


if __name__ == "__main__":
    key = jax.random.PRNGKey(0)
    batch, seq, hidden = 2, 8, 32
    x = jax.random.normal(key, (batch, seq, hidden), dtype=jnp.float32)

    y = gelu(x)
    jax.block_until_ready(y)

    y_ref = _gelu_ref(x)
    assert y.shape == x.shape and y.dtype == x.dtype
    assert jnp.allclose(y, y_ref, atol=1e-5, rtol=1e-5)

    print("KERNEL_OK")
</pallas_src>

<mosaic_0001>
module attributes {stable_mosaic.version = 11 : i64} {
  func.func @_gelu_kernel(%arg0: i32, %arg1: memref<1x512xf32, #tpu.memory_space<vmem>>, %arg2: memref<1x512xf32, #tpu.memory_space<vmem>>) attributes {dimension_semantics = [#tpu.dimension_semantics<parallel>], iteration_bounds = array<i64: 1>, scalar_prefetch = 0 : i64, scratch_operands = 0 : i64, tpu.core_type = #tpu.core_type<tc>, window_params = [{transform_indices = @transform_0, window_bounds = array<i64: 1, 512>}, {transform_indices = @transform_1, window_bounds = array<i64: 1, 512>}]} {
    %c0 = arith.constant 0 : index
    %c0_0 = arith.constant 0 : index
    %0 = vector.load %arg1[%c0, %c0_0] : memref<1x512xf32, #tpu.memory_space<vmem>>, vector<1x512xf32>
    %cst = arith.constant 0.0356774069 : f32
    %1 = vector.broadcast %cst : f32 to vector<1x512xf32>
    %2 = arith.mulf %1, %0 : vector<1x512xf32>
    %3 = arith.mulf %2, %0 : vector<1x512xf32>
    %cst_1 = arith.constant 0.797884583 : f32
    %4 = vector.broadcast %cst_1 : f32 to vector<1x512xf32>
    %5 = arith.addf %4, %3 : vector<1x512xf32>
    %6 = arith.mulf %0, %5 : vector<1x512xf32>
    %cst_2 = arith.constant 5.000000e-01 : f32
    %7 = vector.broadcast %cst_2 : f32 to vector<1x512xf32>
    %8 = arith.mulf %7, %0 : vector<1x512xf32>
    %9 = math.tanh %6 : vector<1x512xf32>
    %10 = arith.mulf %8, %9 : vector<1x512xf32>
    %11 = arith.addf %8, %10 : vector<1x512xf32>
    %c0_3 = arith.constant 0 : index
    %c0_4 = arith.constant 0 : index
    %12 = vector.load %arg2[%c0_3, %c0_4] : memref<1x512xf32, #tpu.memory_space<vmem>>, vector<1x512xf32>
    tpu.vector_store %arg2[%c0_3, %c0_4], %11 {strides = array<i32>} : memref<1x512xf32, #tpu.memory_space<vmem>>, vector<1x512xf32>,
    return
  }
  func.func @transform_0(%arg0: i32) -> (i32, i32) {
    %c0_i32 = arith.constant 0 : i32
    %c0_i32_0 = arith.constant 0 : i32
    return %arg0, %c0_i32 : i32, i32
  }
  func.func @transform_1(%arg0: i32) -> (i32, i32) {
    %c0_i32 = arith.constant 0 : i32
    %c0_i32_0 = arith.constant 0 : i32
    return %arg0, %c0_i32 : i32, i32
  }
}

</mosaic_0001>

<bundles_post_ra>
// kernel: tpu_custom_call.1
= control target key start
LH: loop header
LB: loop body
LE: loop exit
PB: predicated region body
PF: predicated region fallthrough
CT: control target
= control target key end

     0   :  { %6 = vsyncpa [#allocation3], 0  ;;  %s138_s0 = inlined_call_operand.hbm [shape: f32[1,512], index: 0, kind: input, shape index: {}]   ;;  %s139_s1 = inlined_call_operand.hbm [shape: f32[1,512], index: 1, kind: output, shape index: {}]  }
   0x1   :  { %7 = vsyncpa [#allocation4], 0  ;;  %s102_s6 = smov [#allocation2]   ;;  %s54_s10 = scalar_lea.hbm %s138_s0, 64 }
   0x2   :  { %s14_s7 = sshll.u32 %s102_s6, 4  ;;  %p55_p0 = scmp.ne.s32.totalorder %s138_s0, %s54_s10  ;;  %s15_s7 = int_to_ptr.vmem [resolvable:$true] %s14_s7 }
   0x3   :  { %p58_p1 = scmp.lt.u32.totalorder %s54_s10, %s138_s0 }
   0x5   :  { %p60_p2 = pnand %p58_p1, %p55_p0 }
   0x7   :  { %63 = shalt.err (!%p60_p2)
}
   0x8   :  { %s64_s15 = scalar_lea.vmem %s15_s7, 64  ;;  %p69_p4 = scmp.lt.s32.totalorder %s15_s7, %s15_s7 }
   0x9   :  { %p65_p3 = scmp.ne.s32.totalorder %s15_s7, %s64_s15  ;;  %p70_p5 = scmp.lt.s32.totalorder %s64_s15, %s64_s15 }
   0xb   :  { %p71_p6 = por %p70_p5, %p69_p4 }
   0xd   :  { %p72_p7 = pnand %p71_p6, %p65_p3 }
   0xf   :  { %75 = shalt.err (!%p72_p7)
}
  0x10   :  { %17 = dma.hbm_to_vmem [thread:$0]  %s138_s0, 64, %s15_s7, [#allocation3]  }
  0x11   :  { %98 = dma.done.wait [#allocation3], 64  }
  0x12   :  { %99 = vsyncadd [#allocation3], 4294967232  ;;  %v21_v0 = vld [vmem:[#allocation2] sm:$0xf]  ;;  %v30_v6 = vlaneseq  ;;  %s103_s18 = smov [#allocation5]  }
  0x13   :  { %v22_v1 = vmul.f32 0.035677407, %v21_v0  ;;  %v26_v5 = vmul.f32 0.5, %v21_v0  ;;  %s41_s19 = sshll.u32 %s103_s18, 4  ;;  %s42_s19 = int_to_ptr.vmem [resolvable:$true] %s41_s19 }
  0x14   :  { %vm32_vm0 = vcmp.lt.s32.totalorder %v30_v6, 512  ;;  %s76_s20 = scalar_lea.vmem %s42_s19, 64  ;;  %p81_p9 = scmp.lt.s32.totalorder %s42_s19, %s42_s19 }
  0x15   :  { %v23_v2 = vmul.f32 %v22_v1, %v21_v0  ;;  %p77_p8 = scmp.ne.s32.totalorder %s42_s19, %s76_s20  ;;  %p82_p10 = scmp.lt.s32.totalorder %s76_s20, %s76_s20 }
  0x17   :  { %v24_v3 = vadd.f32 0.7978846, %v23_v2  ;;  %p83_p11 = por %p82_p10, %p81_p9 }
  0x19   :  { %v25_v4 = vmul.f32 %v24_v3, %v21_v0  ;;  %p84_p12 = pnand %p83_p11, %p77_p8 }
  0x1b   :  { %52 = vtanh.f32 %v25_v4 }
  0x25   :  { %v53_v7 = vpop.eup %52 }
  0x26   :  { %v28_v8 = vmul.f32 %v53_v7, %v26_v5 }
  0x28   :  { %v29_v9 = vadd.f32 %v28_v8, %v26_v5 }
  0x2a   :  { %34 = vst.msk [vmem:[#allocation5] sm:$0xf] %vm32_vm0, %v29_v9 }
  0x2b   :  { %87 = shalt.err (!%p84_p12)
}
  0x2c   :  { %s88_s22 = scalar_lea.hbm %s139_s1, 64 }
  0x2d   :  { %p89_p13 = scmp.ne.s32.totalorder %s139_s1, %s88_s22  ;;  %p92_p0 = scmp.lt.u32.totalorder %s88_s22, %s139_s1 }
  0x2f   :  { %p94_p1 = pnand %p92_p0, %p89_p13 }
  0x31   :  { %97 = shalt.err (!%p94_p1)
}
  0x32   :  { %44 = dma.vmem_to_hbm [thread:$0]  %s42_s19, 64, %s139_s1, [#allocation4]  }
  0x33   :  { %100 = dma.done.wait [#allocation4], 64  }
  0x34   :  { %101 = vsyncadd [#allocation4], 4294967232 }
  0x35   :  { %48 = vsyncpa [#allocation3], 1 }
  0x36   :  { %49 = vsyncpa [#allocation4], 1 }

</bundles_post_ra>
